<compile_context>
chip_gen: v7x
topology: tpu7x:2x2x1
jax: 0.10.0
libtpu: 0.0.40
codegen_flags: <defaults>
</compile_context>

<pallas_src>
import jax
import jax.numpy as jnp
from jax.experimental import pallas as pl
from jax.experimental.pallas import tpu as pltpu


def convlstm_cell_kernel(p_ref, c_ref, w_ref, h_out_ref, c_out_ref):
    """One (batch, M-tile) block of the ConvLSTM cell update.

    p_ref:     (1, Kp, TM)   bf16  im2col patches + ones row + zero pad rows
    c_ref:     (1, Chid, TM) f32   current cell state (flattened NCHW)
    w_ref:     (Co, Kp)      bf16  conv weight with bias column, Co = 4*Chid
    h_out_ref: (1, Chid, TM) bf16  next hidden state
    c_out_ref: (1, Chid, TM) f32   next cell state
    """
    chid = c_ref.shape[1]
    tm = p_ref.shape[2]

    # Single MXU matmul over the whole padded contraction axis; the bias is
    # included via the folded ones-row / bias-column: (Co, Kp) x (Kp, TM).
    acc = jnp.dot(w_ref[...], p_ref[0], preferred_element_type=jnp.float32)

    # Consume the accumulator in 128-lane halves.  Slices are lane-tile
    # aligned (free views); per-half gates are 4 vregs each, so the working
    # set stays far below the 64-vreg file even with the accumulator live.
    nh = tm // 128 if tm % 128 == 0 else 1
    lt = tm // nh
    for j in range(nh):
        lo, hi = j * lt, (j + 1) * lt
        a = acc[:, lo:hi]

        # Gate order matches torch.split(conv_out, hidden_dim, dim=1): i,f,o,g.
        # Sublane slices at multiples of Chid: aligned, no lane relayout.
        i = jax.nn.sigmoid(a[0 * chid:1 * chid, :])
        f = jax.nn.sigmoid(a[1 * chid:2 * chid, :])
        o = jax.nn.sigmoid(a[2 * chid:3 * chid, :])
        g = jnp.tanh(a[3 * chid:4 * chid, :])

        c_cur = c_ref[0, :, lo:hi]
        c_next = f * c_cur + i * g
        h_next = o * jnp.tanh(c_next)

        c_out_ref[0, :, lo:hi] = c_next                       # 128-lane dense
        h_out_ref[0, :, lo:hi] = h_next.astype(h_out_ref.dtype)


def convlstm_cell_forward(x, h_cur, c_cur, weight, bias, kernel_size,
                          h_dtype=jnp.bfloat16):
    """One ConvLSTMCell step, PyTorch (NCHW / OIHW) layout.

    x:      (B, Cin, H, W)   f32
    h_cur:  (B, Chid, H, W)  f32 (or bf16)
    c_cur:  (B, Chid, H, W)  f32
    weight: (4*Chid, Cin+Chid, kh, kw)  f32  (OIHW, as in nn.Conv2d)
    bias:   (4*Chid,) f32 or None
    returns (h_next[bf16], c_next[f32]), each (B, Chid, H, W).
    """
    B, Cin, H, W = x.shape
    Chid = h_cur.shape[1]
    kh, kw = kernel_size
    # NOTE: odd kernel sizes only (PyTorch 'same' via padding=k//2).
    assert kh % 2 == 1 and kw % 2 == 1, "odd kernel sizes only"
    ph, pw = kh // 2, kw // 2
    Cc = Cin + Chid
    Co = 4 * Chid
    K = Cc * kh * kw
    M = H * W
    Kp = pl.cdiv(K + 1, 128) * 128          # +1 bias row, padded to 128 lanes

    if bias is None:
        bias = jnp.zeros((Co,), jnp.float32)

    # --- wrapper-side layout plumbing (no arithmetic beyond the bias fold) ---
    combined = jnp.concatenate([x, h_cur], axis=1).astype(jnp.bfloat16)
    # im2col in one op; output channel order = c*(kh*kw) + dy*kw + dx, which
    # matches weight.reshape(Co, Cc*kh*kw) (OIHW) directly — no transpose.
    patches = jax.lax.conv_general_dilated_patches(
        combined, (kh, kw), (1, 1), ((ph, ph), (pw, pw)),
        dimension_numbers=("NCHW", "OIHW", "NCHW")).reshape(B, K, M)
    extra = [jnp.ones((B, 1, M), jnp.bfloat16)]               # bias ones-row
    if Kp - K - 1 > 0:
        extra.append(jnp.zeros((B, Kp - K - 1, M), jnp.bfloat16))
    patches = jnp.concatenate([patches] + extra, axis=1)       # (B, Kp, M)

    wcols = [weight.reshape(Co, K).astype(jnp.float32),
             bias.reshape(Co, 1).astype(jnp.float32)]
    if Kp - K - 1 > 0:
        wcols.append(jnp.zeros((Co, Kp - K - 1), jnp.float32))
    wmat = jnp.concatenate(wcols, axis=1).astype(jnp.bfloat16)  # (Co, Kp)

    c_flat = c_cur.reshape(B, Chid, M).astype(jnp.float32)

    # M tile: 256 lanes when possible (full-width MXU pass, half the grid
    # steps), else 128, else the whole row (correct but lane-sparse fallback).
    if M % 256 == 0:
        TM = 256
    elif M % 128 == 0:
        TM = 128
    else:
        TM = M
    grid = (B, M // TM)
    # VMEM per step (double-buffered) is well under 1 MiB here; re-derive TM /
    # set vmem_limit_bytes explicitly before scaling H*W on v7x (64 MiB VMEM).

    h_next, c_next = pl.pallas_call(
        convlstm_cell_kernel,
        out_shape=(jax.ShapeDtypeStruct((B, Chid, M), h_dtype),
                   jax.ShapeDtypeStruct((B, Chid, M), jnp.float32)),
        grid_spec=pltpu.PrefetchScalarGridSpec(
            num_scalar_prefetch=0,
            grid=grid,
            in_specs=[
                pl.BlockSpec((1, Kp, TM), lambda b, m: (b, 0, m)),
                pl.BlockSpec((1, Chid, TM), lambda b, m: (b, 0, m)),
                pl.BlockSpec((Co, Kp), lambda b, m: (0, 0)),
            ],
            out_specs=[
                pl.BlockSpec((1, Chid, TM), lambda b, m: (b, 0, m)),
                pl.BlockSpec((1, Chid, TM), lambda b, m: (b, 0, m)),
            ],
        ),
        compiler_params=pltpu.CompilerParams(
            dimension_semantics=("parallel", "parallel")),
    )(patches, c_flat, wmat)

    return (h_next.reshape(B, Chid, H, W), c_next.reshape(B, Chid, H, W))


def _reference(x, h_cur, c_cur, weight, bias, kernel_size):
    """Pure-JAX f32 NCHW reference mirroring the PyTorch forward."""
    kh, kw = kernel_size
    ph, pw = kh // 2, kw // 2
    combined = jnp.concatenate([x, h_cur], axis=1)
    cc = jax.lax.conv_general_dilated(
        combined, weight, window_strides=(1, 1),
        padding=((ph, ph), (pw, pw)),
        dimension_numbers=("NCHW", "OIHW", "NCHW"))
    cc = cc + bias[None, :, None, None]
    cc_i, cc_f, cc_o, cc_g = jnp.split(cc, 4, axis=1)
    i = jax.nn.sigmoid(cc_i)
    f = jax.nn.sigmoid(cc_f)
    o = jax.nn.sigmoid(cc_o)
    g = jnp.tanh(cc_g)
    c_next = f * c_cur + i * g
    h_next = o * jnp.tanh(c_next)
    return h_next, c_next


if __name__ == "__main__":
    # Shapes consistent with the module: batch=2, input_dim=4, hidden_dim=32,
    # spatial=16x16, kernel_size=(3,3), bias=True.
    B, Cin, Chid, H, W = 2, 4, 32, 16, 16
    kernel_size = (3, 3)
    kh, kw = kernel_size

    key = jax.random.PRNGKey(0)
    kx, khh, kc, kwgt, kb = jax.random.split(key, 5)

    x = jax.random.normal(kx, (B, Cin, H, W), jnp.float32)
    h_cur = jax.random.normal(khh, (B, Chid, H, W), jnp.float32)
    c_cur = jax.random.normal(kc, (B, Chid, H, W), jnp.float32)
    weight = 0.05 * jax.random.normal(kwgt, (4 * Chid, Cin + Chid, kh, kw),
                                      jnp.float32)
    bias = 0.05 * jax.random.normal(kb, (4 * Chid,), jnp.float32)

    # The kernel runs the conv operands (x, h, weight, bias) in bf16 with f32
    # MXU accumulation; round them once so the f32 reference sees exactly the
    # same operand values and the comparison stays tight.
    x = x.astype(jnp.bfloat16).astype(jnp.float32)
    h_cur = h_cur.astype(jnp.bfloat16).astype(jnp.float32)
    weight = weight.astype(jnp.bfloat16).astype(jnp.float32)
    bias = bias.astype(jnp.bfloat16).astype(jnp.float32)

    fwd = jax.jit(convlstm_cell_forward, static_argnames=("kernel_size",))
    h_next, c_next = fwd(x, h_cur, c_cur, weight, bias, kernel_size=kernel_size)
    jax.block_until_ready((h_next, c_next))

    h_ref, c_ref = _reference(x, h_cur, c_cur, weight, bias, kernel_size)

    # h is emitted in bf16 (by design); compare with bf16-level tolerance.
    h_err = float(jnp.max(jnp.abs(h_next.astype(jnp.float32) - h_ref)))
    c_err = float(jnp.max(jnp.abs(c_next - c_ref)))
    assert h_next.dtype == jnp.bfloat16
    assert c_next.dtype == jnp.float32
    assert jnp.allclose(h_next.astype(jnp.float32), h_ref,
                        atol=1e-2, rtol=1e-2), h_err
    assert jnp.allclose(c_next, c_ref, atol=2e-3, rtol=2e-3), c_err

    print("KERNEL_OK")
</pallas_src>

<mosaic_0001>
module attributes {stable_mosaic.version = 11 : i64} {
  func.func @convlstm_cell_kernel(%arg0: i32, %arg1: i32, %arg2: memref<1x384x256xbf16, #tpu.memory_space<vmem>>, %arg3: memref<1x32x256xf32, #tpu.memory_space<vmem>>, %arg4: memref<128x384xbf16, #tpu.memory_space<vmem>>, %arg5: memref<1x32x256xbf16, #tpu.memory_space<vmem>>, %arg6: memref<1x32x256xf32, #tpu.memory_space<vmem>>) attributes {dimension_semantics = [#tpu.dimension_semantics<parallel>, #tpu.dimension_semantics<parallel>], iteration_bounds = array<i64: 2, 1>, scalar_prefetch = 0 : i64, scratch_operands = 0 : i64, tpu.core_type = #tpu.core_type<tc>, window_params = [{transform_indices = @transform_0, window_bounds = array<i64: 1, 384, 256>}, {transform_indices = @transform_1, window_bounds = array<i64: 1, 32, 256>}, {pipeline_mode = #tpu.pipeline_mode<synchronous>, transform_indices = @transform_2, window_bounds = array<i64: 128, 384>}, {transform_indices = @transform_3, window_bounds = array<i64: 1, 32, 256>}, {transform_indices = @transform_4, window_bounds = array<i64: 1, 32, 256>}]} {
    %c0 = arith.constant 0 : index
    %c0_0 = arith.constant 0 : index
    %0 = vector.load %arg4[%c0, %c0_0] : memref<128x384xbf16, #tpu.memory_space<vmem>>, vector<128x384xbf16>
    %c0_1 = arith.constant 0 : index
    %c0_2 = arith.constant 0 : index
    %c0_3 = arith.constant 0 : index
    %1 = vector.load %arg2[%c0_1, %c0_2, %c0_3] : memref<1x384x256xbf16, #tpu.memory_space<vmem>>, vector<1x384x256xbf16>
    %2 = vector.shape_cast %1 : vector<1x384x256xbf16> to vector<384x256xbf16>
    %cst = arith.constant dense<0.000000e+00> : vector<128x256xf32>
    %3 = tpu.matmul %0, %2, %cst {dimension_numbers = #tpu.dot_dimension_numbers<[1], [0], [0], [1], [0, 0, 1, 1], [], []>} : vector<128x384xbf16>, vector<384x256xbf16>, vector<128x256xf32> -> vector<128x256xf32>
    %4 = vector.extract_strided_slice %3 {offsets = [0, 0], sizes = [128, 128], strides = [1, 1]} : vector<128x256xf32> to vector<128x128xf32>
    %5 = vector.extract_strided_slice %4 {offsets = [0, 0], sizes = [32, 128], strides = [1, 1]} : vector<128x128xf32> to vector<32x128xf32>
    %6 = arith.negf %5 : vector<32x128xf32>
    %7 = math.exp %6 : vector<32x128xf32>
    %cst_4 = arith.constant 1.000000e+00 : f32
    %8 = vector.broadcast %cst_4 : f32 to vector<32x128xf32>
    %9 = arith.addf %8, %7 : vector<32x128xf32>
    %10 = arith.divf %8, %9 : vector<32x128xf32>
    %11 = vector.extract_strided_slice %4 {offsets = [32, 0], sizes = [32, 128], strides = [1, 1]} : vector<128x128xf32> to vector<32x128xf32>
    %12 = arith.negf %11 : vector<32x128xf32>
    %13 = math.exp %12 : vector<32x128xf32>
    %cst_5 = arith.constant 1.000000e+00 : f32
    %14 = vector.broadcast %cst_5 : f32 to vector<32x128xf32>
    %15 = arith.addf %14, %13 : vector<32x128xf32>
    %16 = arith.divf %14, %15 : vector<32x128xf32>
    %17 = vector.extract_strided_slice %4 {offsets = [64, 0], sizes = [32, 128], strides = [1, 1]} : vector<128x128xf32> to vector<32x128xf32>
    %18 = arith.negf %17 : vector<32x128xf32>
    %19 = math.exp %18 : vector<32x128xf32>
    %cst_6 = arith.constant 1.000000e+00 : f32
    %20 = vector.broadcast %cst_6 : f32 to vector<32x128xf32>
    %21 = arith.addf %20, %19 : vector<32x128xf32>
    %22 = arith.divf %20, %21 : vector<32x128xf32>
    %23 = vector.extract_strided_slice %4 {offsets = [96, 0], sizes = [32, 128], strides = [1, 1]} : vector<128x128xf32> to vector<32x128xf32>
    %24 = math.tanh %23 : vector<32x128xf32>
    %c0_7 = arith.constant 0 : index
    %c0_8 = arith.constant 0 : index
    %c0_9 = arith.constant 0 : index
    %25 = vector.load %arg3[%c0_7, %c0_8, %c0_9] : memref<1x32x256xf32, #tpu.memory_space<vmem>>, vector<1x32x128xf32>
    %26 = vector.shape_cast %25 : vector<1x32x128xf32> to vector<32x128xf32>
    %27 = arith.mulf %16, %26 : vector<32x128xf32>
    %28 = arith.mulf %10, %24 : vector<32x128xf32>
    %29 = arith.addf %27, %28 : vector<32x128xf32>
    %30 = math.tanh %29 : vector<32x128xf32>
    %31 = arith.mulf %22, %30 : vector<32x128xf32>
    %c0_10 = arith.constant 0 : index
    %c0_11 = arith.constant 0 : index
    %c0_12 = arith.constant 0 : index
    %32 = vector.load %arg6[%c0_10, %c0_11, %c0_12] : memref<1x32x256xf32, #tpu.memory_space<vmem>>, vector<1x32x128xf32>
    %33 = vector.shape_cast %32 : vector<1x32x128xf32> to vector<32x128xf32>
    %34 = vector.shape_cast %29 : vector<32x128xf32> to vector<1x32x128xf32>
    tpu.vector_store %arg6[%c0_10, %c0_11, %c0_12], %34 {strides = array<i32>} : memref<1x32x256xf32, #tpu.memory_space<vmem>>, vector<1x32x128xf32>,
    %35 = arith.truncf %31 : vector<32x128xf32> to vector<32x128xbf16>
    %c0_13 = arith.constant 0 : index
    %c0_14 = arith.constant 0 : index
    %c0_15 = arith.constant 0 : index
    %36 = vector.load %arg5[%c0_13, %c0_14, %c0_15] : memref<1x32x256xbf16, #tpu.memory_space<vmem>>, vector<1x32x128xbf16>
    %37 = vector.shape_cast %36 : vector<1x32x128xbf16> to vector<32x128xbf16>
    %38 = vector.shape_cast %35 : vector<32x128xbf16> to vector<1x32x128xbf16>
    tpu.vector_store %arg5[%c0_13, %c0_14, %c0_15], %38 {strides = array<i32>} : memref<1x32x256xbf16, #tpu.memory_space<vmem>>, vector<1x32x128xbf16>,
    %39 = vector.extract_strided_slice %3 {offsets = [0, 128], sizes = [128, 128], strides = [1, 1]} : vector<128x256xf32> to vector<128x128xf32>
    %40 = vector.extract_strided_slice %39 {offsets = [0, 0], sizes = [32, 128], strides = [1, 1]} : vector<128x128xf32> to vector<32x128xf32>
    %41 = arith.negf %40 : vector<32x128xf32>
    %42 = math.exp %41 : vector<32x128xf32>
    %cst_16 = arith.constant 1.000000e+00 : f32
    %43 = vector.broadcast %cst_16 : f32 to vector<32x128xf32>
    %44 = arith.addf %43, %42 : vector<32x128xf32>
    %45 = arith.divf %43, %44 : vector<32x128xf32>
    %46 = vector.extract_strided_slice %39 {offsets = [32, 0], sizes = [32, 128], strides = [1, 1]} : vector<128x128xf32> to vector<32x128xf32>
    %47 = arith.negf %46 : vector<32x128xf32>
    %48 = math.exp %47 : vector<32x128xf32>
    %cst_17 = arith.constant 1.000000e+00 : f32
    %49 = vector.broadcast %cst_17 : f32 to vector<32x128xf32>
    %50 = arith.addf %49, %48 : vector<32x128xf32>
    %51 = arith.divf %49, %50 : vector<32x128xf32>
    %52 = vector.extract_strided_slice %39 {offsets = [64, 0], sizes = [32, 128], strides = [1, 1]} : vector<128x128xf32> to vector<32x128xf32>
    %53 = arith.negf %52 : vector<32x128xf32>
    %54 = math.exp %53 : vector<32x128xf32>
    %cst_18 = arith.constant 1.000000e+00 : f32
    %55 = vector.broadcast %cst_18 : f32 to vector<32x128xf32>
    %56 = arith.addf %55, %54 : vector<32x128xf32>
    %57 = arith.divf %55, %56 : vector<32x128xf32>
    %58 = vector.extract_strided_slice %39 {offsets = [96, 0], sizes = [32, 128], strides = [1, 1]} : vector<128x128xf32> to vector<32x128xf32>
    %59 = math.tanh %58 : vector<32x128xf32>
    %c0_19 = arith.constant 0 : index
    %c0_20 = arith.constant 0 : index
    %c128 = arith.constant 128 : index
    %60 = vector.load %arg3[%c0_19, %c0_20, %c128] : memref<1x32x256xf32, #tpu.memory_space<vmem>>, vector<1x32x128xf32>
    %61 = vector.shape_cast %60 : vector<1x32x128xf32> to vector<32x128xf32>
    %62 = arith.mulf %51, %61 : vector<32x128xf32>
    %63 = arith.mulf %45, %59 : vector<32x128xf32>
    %64 = arith.addf %62, %63 : vector<32x128xf32>
    %65 = math.tanh %64 : vector<32x128xf32>
    %66 = arith.mulf %57, %65 : vector<32x128xf32>
    %c0_21 = arith.constant 0 : index
    %c0_22 = arith.constant 0 : index
    %c128_23 = arith.constant 128 : index
    %67 = vector.load %arg6[%c0_21, %c0_22, %c128_23] : memref<1x32x256xf32, #tpu.memory_space<vmem>>, vector<1x32x128xf32>
    %68 = vector.shape_cast %67 : vector<1x32x128xf32> to vector<32x128xf32>
    %69 = vector.shape_cast %64 : vector<32x128xf32> to vector<1x32x128xf32>
    tpu.vector_store %arg6[%c0_21, %c0_22, %c128_23], %69 {strides = array<i32>} : memref<1x32x256xf32, #tpu.memory_space<vmem>>, vector<1x32x128xf32>,
    %70 = arith.truncf %66 : vector<32x128xf32> to vector<32x128xbf16>
    %c0_24 = arith.constant 0 : index
    %c0_25 = arith.constant 0 : index
    %c128_26 = arith.constant 128 : index
    %71 = vector.load %arg5[%c0_24, %c0_25, %c128_26] : memref<1x32x256xbf16, #tpu.memory_space<vmem>>, vector<1x32x128xbf16>
    %72 = vector.shape_cast %71 : vector<1x32x128xbf16> to vector<32x128xbf16>
    %73 = vector.shape_cast %70 : vector<32x128xbf16> to vector<1x32x128xbf16>
    tpu.vector_store %arg5[%c0_24, %c0_25, %c128_26], %73 {strides = array<i32>} : memref<1x32x256xbf16, #tpu.memory_space<vmem>>, vector<1x32x128xbf16>,
    return
  }
  func.func @transform_0(%arg0: i32, %arg1: i32) -> (i32, i32, i32) {
    %c0_i32 = arith.constant 0 : i32
    %c0_i32_0 = arith.constant 0 : i32
    return %arg0, %c0_i32, %arg1 : i32, i32, i32
  }
  func.func @transform_1(%arg0: i32, %arg1: i32) -> (i32, i32, i32) {
    %c0_i32 = arith.constant 0 : i32
    %c0_i32_0 = arith.constant 0 : i32
    return %arg0, %c0_i32, %arg1 : i32, i32, i32
  }
  func.func @transform_2(%arg0: i32, %arg1: i32) -> (i32, i32) {
    %c0_i32 = arith.constant 0 : i32
    %c0_i32_0 = arith.constant 0 : i32
    %c0_i32_1 = arith.constant 0 : i32
    return %c0_i32, %c0_i32_0 : i32, i32
  }
  func.func @transform_3(%arg0: i32, %arg1: i32) -> (i32, i32, i32) {
    %c0_i32 = arith.constant 0 : i32
    %c0_i32_0 = arith.constant 0 : i32
    return %arg0, %c0_i32, %arg1 : i32, i32, i32
  }
  func.func @transform_4(%arg0: i32, %arg1: i32) -> (i32, i32, i32) {
    %c0_i32 = arith.constant 0 : i32
    %c0_i32_0 = arith.constant 0 : i32
    return %arg0, %c0_i32, %arg1 : i32, i32, i32
  }
}

</mosaic_0001>

<bundles_post_ra>
// kernel: convlstm_cell_forward.1
= control target key start
LH: loop header
LB: loop body
LE: loop exit
PB: predicated region body
PF: predicated region fallthrough
CT: control target
= control target key end

     0   :  { %s1844_s15 = smov 0   ;;  %s1846_s16 = smov 0   ;;  %s2136_s0 = inlined_call_operand.vmem [shape: bf16[2,384,256], index: 0, kind: input, shape index: {}]   ;;  %s2137_s1 = inlined_call_operand.vmem [shape: f32[2,32,256], index: 1, kind: input, shape index: {}]   ;;  %s2138_s2 = inlined_call_operand.vmem [shape: bf16[128,384], index: 2, kind: input, shape index: {}]   ;;  %s2139_s3 = inlined_call_operand.vmem [shape: bf16[2,32,256], index: 3, kind: output, shape index: {0}]   ;;  %s2140_s4 = inlined_call_operand.vmem [shape: f32[2,32,256], index: 4, kind: output, shape index: {1}]  }
   0x1   :  { %s1848_s17 = smov 0  }
   0x2 LB: > { %s27_s18 = sadd.s32 1, %s1812_s16  ;;  %p1379_p0 = scmp.ge.s32.totalorder %s1816_s17, 1  ;;  %s1816_s17 = sphi %s1848_s17, %s15_s17   ;;  %s1812_s16 = sphi %s1846_s16, %s2142_s16   ;;  %s1808_s15 = sphi %s1844_s15, %s2141_s15  }
   0x3   : > { %p29_p1 = scmp.ge.s32.totalorder %s27_s18, 2  ;;  %p205_p2 = scmp.lt.s32.totalorder %s1816_s17, 3 }
   0x5   : > { %s2144_s18 = smov (%p29_p1, %s27_s18), 0  ;;  %p206_p3 = pnand %p1379_p0, %p205_p2 }
   0x6   : > { %p258_p4 = scmp.lt.s32.totalorder (!%p206_p3), %s1808_s15, 1  ;;  %v1818_v0 = vmov (!%p206_p3), 0   ;;  %v1637_v1 = vld [vmem:[%s2138_s2 + $0x4] ss:$12 sps:$4 sm:$0xff] (!%p206_p3)   ;;  %v1634_v41 = vld [vmem:[%s2138_s2 + $0x8] ss:$12 sps:$4 sm:$0xff] (!%p206_p3)  }
   0x7   : > { %209 = sbr.rel (%p206_p3) target bundleno = 392 (0x188), region = 32  ;;  %891 = vmatprep.mubr.bf16.mxu0 (!%p206_p3), %v1818_v0  ;;  %778 = vmatprep.mubr.bf16.mxu1 (!%p206_p3), %v1637_v1  ;;  %v1638_v46 = vld [vmem:[%s2138_s2 + $0x20] ss:$12 sps:$4 sm:$0xff] (!%p206_p3)   ;;  %v1642_v51 = vld [vmem:[%s2138_s2 + $0x38] ss:$12 sps:$4 sm:$0xff] (!%p206_p3)  }
   0x8   : > { %v1635_v53 = vld [vmem:[%s2138_s2] ss:$12 sps:$4 sm:$0xff] (!%p206_p3)   ;;  %v1639_v54 = vld [vmem:[%s2138_s2 + $0x1c] ss:$12 sps:$4 sm:$0xff] (!%p206_p3)   ;;  %v1641_v56 = vld [vmem:[%s2138_s2 + $0x18] ss:$12 sps:$4 sm:$0xff] (!%p206_p3)  }
   0x9   : > { %v1646_v55 = vld [vmem:[%s2138_s2 + $0x50] ss:$12 sps:$4 sm:$0xff] (!%p206_p3)   ;;  %v1643_v57 = vld [vmem:[%s2138_s2 + $0x34] ss:$12 sps:$4 sm:$0xff] (!%p206_p3)   ;;  %v1647_v60 = vld [vmem:[%s2138_s2 + $0x4c] ss:$12 sps:$4 sm:$0xff] (!%p206_p3)  }
   0xa   : > { %v1650_v58 = vld [vmem:[%s2138_s2 + $0x68] ss:$12 sps:$4 sm:$0xff] (!%p206_p3)   ;;  %v1645_v59 = vld [vmem:[%s2138_s2 + $0x30] ss:$12 sps:$4 sm:$0xff] (!%p206_p3)   ;;  %v1654_v61 = vld [vmem:[%s2138_s2 + $0x80] ss:$12 sps:$4 sm:$0xff] (!%p206_p3)  }
   0xb   : > { %v1649_v62 = vld [vmem:[%s2138_s2 + $0x48] ss:$12 sps:$4 sm:$0xff] (!%p206_p3)   ;;  %v1651_v63 = vld [vmem:[%s2138_s2 + $0x64] ss:$12 sps:$4 sm:$0xff] (!%p206_p3)  }
   0xc   : > { %v1658_v1 = vld [vmem:[%s2138_s2 + $0x98] ss:$12 sps:$4 sm:$0xff] (!%p206_p3)  }
   0xe   : > { %s2146_s15 = smov (!%p258_p4, %s1808_s15), 1 }
   0xf   : > { %s1536_s21 = smul.u32 384, %s2146_s15  ;;  %s1493_s27 = sshll.u32 %s2146_s15, 6 }
  0x10   : > { %s2067_s30 = scalar_lea.vmem %s2137_s1, %s1493_s27  ;;  %s2084_s7 = scalar_lea.vmem %s2140_s4, %s1493_s27 }
  0x11   : > { %s1872_s24 = scalar_lea.vmem %s2136_s0, %s1536_s21  ;;  %s1494_s8 = sshll.u32 %s2146_s15, 5 }
  0x12   : > { %v1562_v2 = vld [vmem:[%s1872_s24 + $0x4] ss:$8 sps:$4 sm:$0xff]   ;;  %v1564_v3 = vld [vmem:[%s1872_s24] ss:$8 sps:$4 sm:$0xff]   ;;  %v1565_v4 = vld [vmem:[%s1872_s24 + $0x14] ss:$8 sps:$4 sm:$0xff]   ;;  %s2113_s10 = scalar_lea.vmem %s2139_s3, %s1494_s8 }
  0x13   : > { %746 = vmatprep.subr.bf16.mxu1 %v1562_v2  ;;  %v1567_v5 = vld [vmem:[%s1872_s24 + $0x10] ss:$8 sps:$4 sm:$0xff]   ;;  %v1568_v6 = vld [vmem:[%s1872_s24 + $0x24] ss:$8 sps:$4 sm:$0xff]   ;;  %v1570_v7 = vld [vmem:[%s1872_s24 + $0x20] ss:$8 sps:$4 sm:$0xff]  }
  0x14   : > { %747 = vmatpush1.bf16.msra.mxu1 %v1564_v3  ;;  %v1571_v8 = vld [vmem:[%s1872_s24 + $0x34] ss:$8 sps:$4 sm:$0xff]   ;;  %v1573_v9 = vld [vmem:[%s1872_s24 + $0x30] ss:$8 sps:$4 sm:$0xff]   ;;  %v1586_v10 = vld [vmem:[%s1872_s24 + $0x104] ss:$8 sps:$4 sm:$0xff]  }
  0x15   : > { %748 = vmatprep.subr.bf16.mxu1 %v1565_v4  ;;  %v1588_v11 = vld [vmem:[%s1872_s24 + $0x100] ss:$8 sps:$4 sm:$0xff]   ;;  %v1574_v12 = vld [vmem:[%s1872_s24 + $0x44] ss:$8 sps:$4 sm:$0xff]   ;;  %859 = vmatprep.subr.bf16.mxu0 %v1586_v10  ;;  %v1592_v13 = vld [vmem:[%s1872_s24 + $0x114] ss:$8 sps:$4 sm:$0xff]  }
  0x16   : > { %860 = vmatpush1.bf16.msra.mxu0 %v1588_v11  ;;  %v1594_v14 = vld [vmem:[%s1872_s24 + $0x110] ss:$8 sps:$4 sm:$0xff]   ;;  %v1576_v15 = vld [vmem:[%s1872_s24 + $0x40] ss:$8 sps:$4 sm:$0xff]   ;;  %v1577_v16 = vld [vmem:[%s1872_s24 + $0x54] ss:$8 sps:$4 sm:$0xff]  }
  0x17   : > { %861 = vmatprep.subr.bf16.mxu0 %v1592_v13  ;;  %v1598_v17 = vld [vmem:[%s1872_s24 + $0x124] ss:$8 sps:$4 sm:$0xff]   ;;  %v1600_v18 = vld [vmem:[%s1872_s24 + $0x120] ss:$8 sps:$4 sm:$0xff]   ;;  %v1579_v19 = vld [vmem:[%s1872_s24 + $0x50] ss:$8 sps:$4 sm:$0xff]  }
  0x18   : > { %749 = vmatpush1.bf16.msra.mxu1 %v1567_v5  ;;  %v1604_v20 = vld [vmem:[%s1872_s24 + $0x134] ss:$8 sps:$4 sm:$0xff]   ;;  %v1580_v21 = vld [vmem:[%s1872_s24 + $0x64] ss:$8 sps:$4 sm:$0xff]   ;;  %v1606_v22 = vld [vmem:[%s1872_s24 + $0x130] ss:$8 sps:$4 sm:$0xff]  }
  0x19   : > { %750 = vmatprep.subr.bf16.mxu1 %v1568_v6  ;;  %v1582_v23 = vld [vmem:[%s1872_s24 + $0x60] ss:$8 sps:$4 sm:$0xff]   ;;  %v1610_v24 = vld [vmem:[%s1872_s24 + $0x144] ss:$8 sps:$4 sm:$0xff]   ;;  %v1583_v25 = vld [vmem:[%s1872_s24 + $0x74] ss:$8 sps:$4 sm:$0xff]  }
  0x1a   : > { %862 = vmatpush1.bf16.msra.mxu0 %v1594_v14  ;;  %v1612_v26 = vld [vmem:[%s1872_s24 + $0x140] ss:$8 sps:$4 sm:$0xff]   ;;  %v1585_v27 = vld [vmem:[%s1872_s24 + $0x70] ss:$8 sps:$4 sm:$0xff]   ;;  %v1616_v28 = vld [vmem:[%s1872_s24 + $0x154] ss:$8 sps:$4 sm:$0xff]  }
  0x1b   : > { %863 = vmatprep.subr.bf16.mxu0 %v1598_v17  ;;  %v1589_v29 = vld [vmem:[%s1872_s24 + $0x84] ss:$8 sps:$4 sm:$0xff]   ;;  %v1618_v30 = vld [vmem:[%s1872_s24 + $0x150] ss:$8 sps:$4 sm:$0xff]   ;;  %v1591_v31 = vld [vmem:[%s1872_s24 + $0x80] ss:$8 sps:$4 sm:$0xff]  }
  0x1c   : > { %751 = vmatpush1.bf16.msra.mxu1 %v1570_v7  ;;  %v1622_v32 = vld [vmem:[%s1872_s24 + $0x164] ss:$8 sps:$4 sm:$0xff]   ;;  %v1595_v33 = vld [vmem:[%s1872_s24 + $0x94] ss:$8 sps:$4 sm:$0xff]   ;;  %v1597_v34 = vld [vmem:[%s1872_s24 + $0x90] ss:$8 sps:$4 sm:$0xff]  }
  0x1d   : > { %752 = vmatprep.subr.bf16.mxu1 %v1571_v8  ;;  %v1624_v35 = vld [vmem:[%s1872_s24 + $0x160] ss:$8 sps:$4 sm:$0xff]   ;;  %v1628_v36 = vld [vmem:[%s1872_s24 + $0x174] ss:$8 sps:$4 sm:$0xff]   ;;  %v1601_v37 = vld [vmem:[%s1872_s24 + $0xa4] ss:$8 sps:$4 sm:$0xff]  }
  0x1e   : > { %864 = vmatpush1.bf16.msra.mxu0 %v1600_v18  ;;  %v1630_v38 = vld [vmem:[%s1872_s24 + $0x170] ss:$8 sps:$4 sm:$0xff]   ;;  %v1603_v39 = vld [vmem:[%s1872_s24 + $0xa0] ss:$8 sps:$4 sm:$0xff]   ;;  %v1607_v40 = vld [vmem:[%s1872_s24 + $0xb4] ss:$8 sps:$4 sm:$0xff]  }
  0x1f   : > { %865 = vmatprep.subr.bf16.mxu0 %v1604_v20  ;;  %v1609_v42 = vld [vmem:[%s1872_s24 + $0xb0] ss:$8 sps:$4 sm:$0xff]   ;;  %v1613_v43 = vld [vmem:[%s1872_s24 + $0xc4] ss:$8 sps:$4 sm:$0xff]   ;;  %v1615_v44 = vld [vmem:[%s1872_s24 + $0xc0] ss:$8 sps:$4 sm:$0xff]  }
  0x20   : > { %753 = vmatpush1.bf16.msra.mxu1 %v1573_v9  ;;  %v1619_v45 = vld [vmem:[%s1872_s24 + $0xd4] ss:$8 sps:$4 sm:$0xff]   ;;  %v1621_v47 = vld [vmem:[%s1872_s24 + $0xd0] ss:$8 sps:$4 sm:$0xff]   ;;  %v1625_v48 = vld [vmem:[%s1872_s24 + $0xe4] ss:$8 sps:$4 sm:$0xff]  }
  0x21   : > { %754 = vmatprep.subr.bf16.mxu1 %v1574_v12  ;;  %v1627_v49 = vld [vmem:[%s1872_s24 + $0xe0] ss:$8 sps:$4 sm:$0xff]   ;;  %v1631_v50 = vld [vmem:[%s1872_s24 + $0xf4] ss:$8 sps:$4 sm:$0xff]   ;;  %v1633_v52 = vld [vmem:[%s1872_s24 + $0xf0] ss:$8 sps:$4 sm:$0xff]  }
  0x22   : > { %866 = vmatpush1.bf16.msra.mxu0 %v1606_v22  ;;  %v1653_v2 = vld [vmem:[%s2138_s2 + $0x60] ss:$12 sps:$4 sm:$0xff]   ;;  %v1655_v3 = vld [vmem:[%s2138_s2 + $0x7c] ss:$12 sps:$4 sm:$0xff]   ;;  %v1657_v5 = vld [vmem:[%s2138_s2 + $0x78] ss:$12 sps:$4 sm:$0xff]  }
  0x23   : > { %867 = vmatprep.subr.bf16.mxu0 %v1610_v24  ;;  %v1662_v4 = vld [vmem:[%s2138_s2 + $0xb0] ss:$12 sps:$4 sm:$0xff]   ;;  %v1659_v6 = vld [vmem:[%s2138_s2 + $0x94] ss:$12 sps:$4 sm:$0xff]   ;;  %v1663_v7 = vld [vmem:[%s2138_s2 + $0xac] ss:$12 sps:$4 sm:$0xff]  }
  0x24   : > { %755 = vmatpush1.bf16.msra.mxu1 %v1576_v15  ;;  %v1665_v8 = vld [vmem:[%s2138_s2 + $0xa8] ss:$12 sps:$4 sm:$0xff]  }
  0x25   : > { %756 = vmatprep.subr.bf16.mxu1 %v1577_v16 }
  0x26   : > { %868 = vmatpush1.bf16.msra.mxu0 %v1612_v26 }
  0x27   : > { %869 = vmatprep.subr.bf16.mxu0 %v1616_v28 }
  0x28   : > { %757 = vmatpush1.bf16.msra.mxu1 %v1579_v19 }
  0x29   : > { %758 = vmatprep.subr.bf16.mxu1 %v1580_v21 }
  0x2a   : > { %870 = vmatpush1.bf16.msra.mxu0 %v1618_v30 }
  0x2b   : > { %871 = vmatprep.subr.bf16.mxu0 %v1622_v32 }
  0x2c   : > { %759 = vmatpush1.bf16.msra.mxu1 %v1582_v23 }
  0x2d   : > { %760 = vmatprep.subr.bf16.mxu1 %v1583_v25 }
  0x2e   : > { %872 = vmatpush1.bf16.msra.mxu0 %v1624_v35 }
  0x2f   : > { %873 = vmatprep.subr.bf16.mxu0 %v1628_v36 }
  0x30   : > { %761 = vmatpush1.bf16.msra.mxu1 %v1585_v27 }
  0x31   : > { %762 = vmatprep.subr.bf16.mxu1 %v1589_v29 }
  0x32   : > { %874 = vmatpush1.bf16.msra.mxu0 %v1630_v38 }
  0x34   : > { %763 = vmatpush1.bf16.msra.mxu1 %v1591_v31 }
  0x35   : > { %764 = vmatprep.subr.bf16.mxu1 %v1595_v33  ;;  %892 = vmatmul.mubr.bf16.vlgmr.msra.gmra.mrb[0].mxu0 %v1634_v41 }
  0x36   : > { %901 = vmatprep.mubr.bf16.mxu0 %v1818_v0 }
  0x38   : > { %765 = vmatpush1.bf16.msra.mxu1 %v1597_v34 }
  0x39   : > { %766 = vmatprep.subr.bf16.mxu1 %v1601_v37 }
  0x3c   : > { %767 = vmatpush1.bf16.msra.mxu1 %v1603_v39 }
  0x3d   : > { %768 = vmatprep.subr.bf16.mxu1 %v1607_v40  ;;  %902 = vmatmul.mubr.bf16.gmra.mrb[4].mxu0 %v1638_v46 }
  0x3e   : > { %911 = vmatprep.mubr.bf16.mxu0 %v1818_v0 }
  0x40   : > { %769 = vmatpush1.bf16.msra.mxu1 %v1609_v42 }
  0x41   : > { %770 = vmatprep.subr.bf16.mxu1 %v1613_v43 }
  0x44   : > { %771 = vmatpush1.bf16.msra.mxu1 %v1615_v44 }
  0x45   : > { %772 = vmatprep.subr.bf16.mxu1 %v1619_v45  ;;  %912 = vmatmul.mubr.bf16.gmra.mrb[8].mxu0 %v1642_v51 }
  0x46   : > { %921 = vmatprep.mubr.bf16.mxu0 %v1818_v0 }
  0x48   : > { %773 = vmatpush1.bf16.msra.mxu1 %v1621_v47 }
  0x49   : > { %774 = vmatprep.subr.bf16.mxu1 %v1625_v48 }
  0x4c   : > { %775 = vmatpush1.bf16.msra.mxu1 %v1627_v49 }
  0x4d   : > { %776 = vmatprep.subr.bf16.mxu1 %v1631_v50  ;;  %922 = vmatmul.mubr.bf16.gmra.mrb[12].mxu0 %v1646_v55 }
  0x4e   : > { %931 = vmatprep.mubr.bf16.mxu0 %v1818_v0 }
  0x50   : > { %777 = vmatpush1.bf16.msra.mxu1 %v1633_v52 }
  0x53   : > { %779 = vmatmul.mubr.bf16.vlgmr.msra.gmra.mrb[0].mxu1 %v1635_v53 }
  0x54   : > { %788 = vmatprep.mubr.bf16.mxu1 %v1639_v54 }
  0x55   : > { %932 = vmatmul.mubr.bf16.gmra.mrb[16].mxu0 %v1650_v58 }
  0x56   : > { %941 = vmatprep.mubr.bf16.mxu0 %v1818_v0 }
  0x5b   : > { %789 = vmatmul.mubr.bf16.gmra.mrb[4].mxu1 %v1641_v56 }
  0x5c   : > { %798 = vmatprep.mubr.bf16.mxu1 %v1643_v57 }
  0x5d   : > { %942 = vmatmul.mubr.bf16.gmra.mrb[20].mxu0 %v1654_v61 }
  0x5e   : > { %951 = vmatprep.mubr.bf16.mxu0 %v1818_v0 }
  0x63   : > { %799 = vmatmul.mubr.bf16.gmra.mrb[8].mxu1 %v1645_v59 }
  0x64   : > { %808 = vmatprep.mubr.bf16.mxu1 %v1647_v60 }
  0x65   : > { %952 = vmatmul.mubr.bf16.gmra.mrb[24].mxu0 %v1658_v1 }
  0x66   : > { %961 = vmatprep.mubr.bf16.mxu0 %v1818_v0  ;;  %v1661_v0 = vld [vmem:[%s2138_s2 + $0x90] ss:$12 sps:$4 sm:$0xff]  }
  0x6b   : > { %809 = vmatmul.mubr.bf16.gmra.mrb[12].mxu1 %v1649_v62 }
  0x6c   : > { %818 = vmatprep.mubr.bf16.mxu1 %v1651_v63 }
  0x6d   : > { %962 = vmatmul.mubr.bf16.gmra.mrb[28].mxu0 %v1662_v4 }
  0x73   : > { %819 = vmatmul.mubr.bf16.gmra.mrb[16].mxu1 %v1653_v2 }
  0x74   : > { %828 = vmatprep.mubr.bf16.mxu1 %v1655_v3 }
  0x7b   : > { %829 = vmatmul.mubr.bf16.gmra.mrb[20].mxu1 %v1657_v5 }
  0x7c   : > { %838 = vmatprep.mubr.bf16.mxu1 %v1659_v6 }
  0x83   : > { %839 = vmatmul.mubr.bf16.gmra.mrb[24].mxu1 %v1661_v0 }
  0x84   : > { %848 = vmatprep.mubr.bf16.mxu1 %v1663_v7 }
  0x8b   : > { %849 = vmatmul.mubr.bf16.gmra.mrb[28].mxu1 %v1665_v8 }
 0x108   : > { %v893_v9 = vpop.f32.mrb[0].mxu0 }
 0x109   : > { %v895_v10 = vpop.f32.mrb[1].mxu0 }
 0x10a   : > { %v897_v11 = vpop.f32.mrb[2].mxu0 }
 0x10b   : > { %v899_v12 = vpop.f32.mrb[3].mxu0 }
 0x110   : > { %v903_v13 = vpop.f32.mrb[4].mxu0 }
 0x111   : > { %v905_v14 = vpop.f32.mrb[5].mxu0 }
 0x112   : > { %v907_v15 = vpop.f32.mrb[6].mxu0 }
 0x113   : > { %v909_v16 = vpop.f32.mrb[7].mxu0 }
 0x118   : > { %v913_v17 = vpop.f32.mrb[8].mxu0 }
 0x119   : > { %v915_v18 = vpop.f32.mrb[9].mxu0 }
 0x11a   : > { %v917_v19 = vpop.f32.mrb[10].mxu0 }
 0x11b   : > { %v919_v20 = vpop.f32.mrb[11].mxu0 }
 0x120   : > { %v923_v28 = vpop.f32.mrb[12].mxu0 }
 0x121   : > { %v925_v30 = vpop.f32.mrb[13].mxu0 }
 0x122   : > { %v927_v31 = vpop.f32.mrb[14].mxu0 }
 0x123   : > { %v1998_v32 = vpop.f32.mrb[15].mxu0 }
 0x126   : > { %v780_v21 = vpop.f32.mrb[0].mxu1 }
 0x127   : > { %v894_v22 = vadd.f32 %v893_v9, %v780_v21  ;;  %v782_v23 = vpop.f32.mrb[1].mxu1 }
 0x128   : > { %v896_v24 = vadd.f32 %v895_v10, %v782_v23  ;;  %v784_v25 = vpop.f32.mrb[2].mxu1  ;;  %v2000_v43 = vpop.f32.mrb[16].mxu0 }
 0x129   : > { %v898_v26 = vadd.f32 %v897_v11, %v784_v25  ;;  %v786_v27 = vpop.f32.mrb[3].mxu1  ;;  %v1459_v33 = vmul.f32 -1.442695, %v894_v22  ;;  %v2002_v45 = vpop.f32.mrb[17].mxu0 }
 0x12a   : > { %v900_v29 = vadd.f32 %v899_v12, %v786_v27  ;;  %v1475_v35 = vmul.f32 -1.442695, %v896_v24  ;;  %v2004_v47 = vpop.f32.mrb[18].mxu0 }
 0x12b   : > { %v1460_v38 = vmul.f32 -1.442695, %v898_v26  ;;  %1666 = vpow2.f32 %v1459_v33  ;;  %v2006_v48 = vpop.f32.mrb[19].mxu0 }
 0x12c   : > { %1668 = vpow2.f32 %v1475_v35  ;;  %v1476_v46 = vmul.f32 -1.442695, %v900_v29 }
 0x12d   : > { %1670 = vpow2.f32 %v1460_v38 }
 0x12e   : > { %v790_v34 = vpop.f32.mrb[4].mxu1  ;;  %1672 = vpow2.f32 %v1476_v46 }
 0x12f   : > { %v904_v36 = vadd.f32 %v903_v13, %v790_v34  ;;  %v792_v37 = vpop.f32.mrb[5].mxu1 }
 0x130   : > { %v906_v39 = vadd.f32 %v905_v14, %v792_v37  ;;  %v794_v40 = vpop.f32.mrb[6].mxu1  ;;  %v2008_v60 = vpop.f32.mrb[20].mxu0 }
 0x131   : > { %v908_v41 = vadd.f32 %v907_v15, %v794_v40  ;;  %v796_v42 = vpop.f32.mrb[7].mxu1  ;;  %v1461_v49 = vmul.f32 -1.442695, %v904_v36  ;;  %v2010_v63 = vpop.f32.mrb[21].mxu0 }
 0x132   : > { %v910_v44 = vadd.f32 %v909_v16, %v796_v42  ;;  %v1477_v51 = vmul.f32 -1.442695, %v906_v39  ;;  %v2012_v2 = vpop.f32.mrb[22].mxu0 }
 0x133   : > { %v1462_v54 = vmul.f32 -1.442695, %v908_v41  ;;  %1674 = vpow2.f32 %v1461_v49  ;;  %v2014_v5 = vpop.f32.mrb[23].mxu0 }
 0x134   : > { %v1478_v57 = vmul.f32 -1.442695, %v910_v44  ;;  %1676 = vpow2.f32 %v1477_v51 }
 0x135   : > { %v1667_v3 = vpop.eup %1666  ;;  %1678 = vpow2.f32 %v1462_v54 }
 0x136   : > { %v800_v50 = vpop.f32.mrb[8].mxu1  ;;  %v1669_v6 = vpop.eup %1668  ;;  %1680 = vpow2.f32 %v1478_v57  ;;  %v984_v9 = vadd.f32 1.0, %v1667_v3 }
 0x137   : > { %v914_v52 = vadd.f32 %v913_v17, %v800_v50  ;;  %v802_v53 = vpop.f32.mrb[9].mxu1  ;;  %v1671_v7 = vpop.eup %1670  ;;  %v1108_v12 = vadd.f32 1.0, %v1669_v6 }
 0x138   : > { %v916_v55 = vadd.f32 %v915_v18, %v802_v53  ;;  %v804_v56 = vpop.f32.mrb[10].mxu1  ;;  %v1673_v15 = vpop.eup %1672  ;;  %v985_v16 = vadd.f32 1.0, %v1671_v7 }
 0x139   : > { %v918_v58 = vadd.f32 %v917_v19, %v804_v56  ;;  %v806_v59 = vpop.f32.mrb[11].mxu1  ;;  %v1463_v61 = vmul.f32 -1.442695, %v914_v52  ;;  %v2016_v19 = vpop.f32.mrb[24].mxu0  ;;  %v1109_v26 = vadd.f32 1.0, %v1673_v15 }
 0x13a   : > { %v920_v62 = vadd.f32 %v919_v20, %v806_v59  ;;  %v1479_v1 = vmul.f32 -1.442695, %v916_v55  ;;  %v2019_v22 = vpop.f32.mrb[25].mxu0 }
 0x13b   : > { %v1464_v4 = vmul.f32 -1.442695, %v918_v58  ;;  %1682 = vpow2.f32 %v1463_v61  ;;  %v2021_v25 = vpop.f32.mrb[26].mxu0 }
 0x13c   : > { %v1480_v0 = vmul.f32 -1.442695, %v920_v62  ;;  %1684 = vpow2.f32 %v1479_v1  ;;  %v2023_v27 = vpop.f32.mrb[27].mxu0 }
 0x13d   : > { %1686 = vpow2.f32 %v1464_v4  ;;  %v1675_v23 = vpop.eup %1674 }
 0x13e   : > { %v810_v8 = vpop.f32.mrb[12].mxu1  ;;  %1688 = vpow2.f32 %v1480_v0 }
 0x13f   : > { %v924_v10 = vadd.f32 %v923_v28, %v810_v8  ;;  %v812_v11 = vpop.f32.mrb[13].mxu1  ;;  %1690 = vrcp.f32 %v984_v9  ;;  %v1677_v28 = vpop.eup %1676 }
 0x140   : > { %v926_v13 = vadd.f32 %v925_v30, %v812_v11  ;;  %v814_v14 = vpop.f32.mrb[14].mxu1  ;;  %1692 = vrcp.f32 %v1108_v12  ;;  %v1679_v30 = vpop.eup %1678  ;;  %v1110_v38 = vadd.f32 1.0, %v1677_v28 }
 0x141   : > { %v928_v17 = vadd.f32 %v927_v31, %v814_v14  ;;  %v816_v18 = vpop.f32.mrb[15].mxu1  ;;  %v1465_v20 = vmul.f32 -1.442695, %v924_v10  ;;  %1694 = vrcp.f32 %v985_v16  ;;  %v986_v31 = vadd.f32 1.0, %v1675_v23  ;;  %v1681_v34 = vpop.eup %1680 }
 0x142   : > { %v930_v21 = vadd.f32 %v1998_v32, %v816_v18  ;;  %v1481_v24 = vmul.f32 -1.442695, %v926_v13  ;;  %v987_v42 = vadd.f32 1.0, %v1679_v30  ;;  %v2028_v49 = vpop.f32.mrb[28].mxu0  ;;  %v1111_v51 = vadd.f32 1.0, %v1681_v34 }
 0x143   : > { %v1466_v29 = vmul.f32 -1.442695, %v928_v17  ;;  %1696 = vpow2.f32 %v1465_v20  ;;  %v2031_v52 = vpop.f32.mrb[29].mxu0 }
 0x144   : > { %1698 = vpow2.f32 %v1481_v24  ;;  %v1482_v32 = vmul.f32 -1.442695, %v930_v21 }
 0x145   : > { %v1683_v37 = vpop.eup %1682  ;;  %1700 = vrcp.f32 %v1109_v26 }
 0x146   : > { %v820_v33 = vpop.f32.mrb[16].mxu1  ;;  %v1685_v41 = vpop.eup %1684  ;;  %1702 = vpow2.f32 %v1466_v29  ;;  %v1008_v54 = vadd.f32 1.0, %v1683_v37 }
 0x147   : > { %v934_v35 = vadd.f32 %v2000_v43, %v820_v33  ;;  %v822_v36 = vpop.f32.mrb[17].mxu1  ;;  %v1687_v50 = vpop.eup %1686  ;;  %1704 = vrcp.f32 %v986_v31  ;;  %v1132_v55 = vadd.f32 1.0, %v1685_v41 }
 0x148   : > { %v936_v39 = vadd.f32 %v2002_v45, %v822_v36  ;;  %v824_v40 = vpop.f32.mrb[18].mxu1  ;;  %v1689_v53 = vpop.eup %1688  ;;  %1706 = vpow2.f32 %v1482_v32  ;;  %v1009_v57 = vadd.f32 1.0, %v1687_v50 }
 0x149   : > { %v938_v44 = vadd.f32 %v2004_v47, %v824_v40  ;;  %v826_v46 = vpop.f32.mrb[19].mxu1  ;;  %v2033_v45 = vpop.f32.mrb[30].mxu0  ;;  %1708 = vrcp.f32 %v1110_v38  ;;  %v1133_v59 = vadd.f32 1.0, %v1689_v53  ;;  %v1467_v62 = vmul.f32 -1.442695, %v934_v35  ;;  %v1048_v53 = vld [vmem:[%s2067_s30] sm:$0xff] }
 0x14a   : > { %v940_v43 = vadd.f32 %v2006_v48, %v826_v46  ;;  %v2035_v56 = vpop.f32.mrb[31].mxu0  ;;  %v2037_v47 = vpop.eup %1690  ;;  %1710 = vrcp.f32 %v987_v42  ;;  %v1483_v6 = vmul.f32 -1.442695, %v936_v39 }
 0x14b   : > { %v2039_v58 = vpop.eup %1692  ;;  %1712 = vrcp.f32 %v1111_v51  ;;  %v1468_v9 = vmul.f32 -1.442695, %v938_v44 }
 0x14c   : > { %v2041_v61 = vpop.eup %1694  ;;  %1714 = vrcp.f32 %v1008_v54  ;;  %v1484_v13 = vmul.f32 -1.442695, %v940_v43 }
 0x14d   : > { %v1697_v4 = vpop.eup %1696  ;;  %1716 = vrcp.f32 %v1132_v55 }
 0x14e   : > { %v830_v48 = vpop.f32.mrb[20].mxu1  ;;  %v1699_v8 = vpop.eup %1698  ;;  %1718 = vrcp.f32 %v1009_v57  ;;  %v1010_v15 = vadd.f32 1.0, %v1697_v4 }
 0x14f   : > { %v944_v1 = vadd.f32 %v2008_v60, %v830_v48  ;;  %v832_v3 = vpop.f32.mrb[21].mxu1  ;;  %v2046_v12 = vpop.eup %1700  ;;  %1720 = vrcp.f32 %v1133_v59  ;;  %v1134_v17 = vadd.f32 1.0, %v1699_v8 }
 0x150   : > { %v946_v0 = vadd.f32 %v2010_v63, %v832_v3  ;;  %v834_v7 = vpop.f32.mrb[22].mxu1  ;;  %v1703_v60 = vpop.eup %1702  ;;  %1722 = vpow2.f32 %v1467_v62 }
 0x151   : > { %v948_v10 = vadd.f32 %v2012_v2, %v834_v7  ;;  %v836_v11 = vpop.f32.mrb[23].mxu1  ;;  %v2049_v16 = vpop.eup %1704  ;;  %1724 = vpow2.f32 %v1483_v6  ;;  %v1011_v20 = vadd.f32 1.0, %v1703_v60  ;;  %v1469_v23 = vmul.f32 -1.442695, %v944_v1  ;;  %v1049_v7 = vld [vmem:[%s2067_s30 + $0x10] sm:$0xff] }
 0x152   : > { %v950_v14 = vadd.f32 %v2014_v5, %v836_v11  ;;  %v1707_v63 = vpop.eup %1706  ;;  %1726 = vpow2.f32 %v1468_v9  ;;  %v1485_v33 = vmul.f32 -1.442695, %v946_v0  ;;  %v1173_v9 = vld [vmem:[%s2067_s30 + $0x18] sm:$0xff] }
 0x153   : > { %v2051_v18 = vpop.eup %1708  ;;  %1728 = vpow2.f32 %v1484_v13  ;;  %v1135_v28 = vadd.f32 1.0, %v1707_v63 }
 0x154   : > { %v2053_v21 = vpop.eup %1710  ;;  %1730 = vrcp.f32 %v1010_v15 }
 0x155   : > { %v2056_v26 = vpop.eup %1712  ;;  %1732 = vrcp.f32 %v1134_v17 }
 0x156   : > { %v840_v2 = vpop.f32.mrb[24].mxu1  ;;  %v1715_v31 = vpop.eup %1714 }
 0x157   : > { %v954_v5 = vadd.f32 %v2016_v19, %v840_v2  ;;  %v842_v24 = vpop.f32.mrb[25].mxu1  ;;  %v1717_v35 = vpop.eup %1716 }
 0x158   : > { %v956_v29 = vadd.f32 %v2019_v22, %v842_v24  ;;  %v844_v30 = vpop.f32.mrb[26].mxu1  ;;  %v1719_v36 = vpop.eup %1718 }
 0x159   : > { %1734 = vtanh.f32 %v954_v5  ;;  %v958_v34 = vadd.f32 %v2021_v25, %v844_v30  ;;  %v846_v32 = vpop.f32.mrb[27].mxu1  ;;  %v1721_v37 = vpop.eup %1720  ;;  %v1470_v25 = vmul.f32 -1.442695, %v948_v10  ;;  %v1053_v17 = vmul.f32 %v1719_v36, %v1049_v7 }
 0x15a   : > { %1736 = vrcp.f32 %v1011_v20  ;;  %v960_v19 = vadd.f32 %v2023_v27, %v846_v32  ;;  %v1723_v38 = vpop.eup %1722  ;;  %v1486_v27 = vmul.f32 -1.442695, %v950_v14  ;;  %v1050_v14 = vld [vmem:[%s2067_s30 + $0x20] sm:$0xff]  ;;  %v1177_v2 = vmul.f32 %v1721_v37, %v1173_v9  ;;  %v1051_v32 = vld [vmem:[%s2067_s30 + $0x30] sm:$0xff] }
 0x15b   : > { %1738 = vpow2.f32 %v1469_v23  ;;  %v1725_v22 = vpop.eup %1724  ;;  %v1032_v46 = vadd.f32 1.0, %v1723_v38  ;;  %v1175_v38 = vld [vmem:[%s2067_s30 + $0x38] sm:$0xff] }
 0x15c   : > { %1740 = vrcp.f32 %v1135_v28  ;;  %v1727_v40 = vpop.eup %1726  ;;  %v1156_v54 = vadd.f32 1.0, %v1725_v22 }
 0x15d   : > { %1742 = vpow2.f32 %v1485_v33  ;;  %v1729_v44 = vpop.eup %1728  ;;  %v1033_v4 = vadd.f32 1.0, %v1727_v40  ;;  %v1174_v33 = vld [vmem:[%s2067_s30 + $0x28] sm:$0xff] }
 0x15e   : > { %1744 = vtanh.f32 %v956_v29  ;;  %v850_v39 = vpop.f32.mrb[28].mxu1  ;;  %v1731_v43 = vpop.eup %1730  ;;  %v1157_v8 = vadd.f32 1.0, %v1729_v44 }
 0x15f   : > { %1746 = vtanh.f32 %v958_v34  ;;  %v964_v41 = vadd.f32 %v2028_v49, %v850_v39  ;;  %v852_v42 = vpop.f32.mrb[29].mxu1  ;;  %v2073_v59 = vpop.eup %1732  ;;  %v1054_v28 = vmul.f32 %v1731_v43, %v1050_v14 }
 0x160   : > { %1748 = vtanh.f32 %v960_v19  ;;  %v966_v50 = vadd.f32 %v2031_v52, %v852_v42  ;;  %v854_v51 = vpop.f32.mrb[30].mxu1  ;;  %v1052_v52 = vmul.f32 %v1715_v31, %v1048_v53  ;;  %v1178_v37 = vmul.f32 %v2073_v59, %v1174_v33 }
 0x161   : > { %1750 = vtanh.f32 %v964_v41  ;;  %v968_v55 = vadd.f32 %v2033_v45, %v854_v51  ;;  %v856_v57 = vpop.f32.mrb[31].mxu1 }
 0x162   : > { %1752 = vpow2.f32 %v1470_v25  ;;  %v970_v49 = vadd.f32 %v2035_v56, %v856_v57  ;;  %v1172_v56 = vld [vmem:[%s2067_s30 + $0x8] sm:$0xff] }
 0x163   : > { %v1735_v48 = vpop.eup %1734  ;;  %1754 = vpow2.f32 %v1486_v27  ;;  %v1176_v13 = vmul.f32 %v1717_v35, %v1172_v56 }
 0x164   : > { %v2076_v62 = vpop.eup %1736  ;;  %1756 = vrcp.f32 %v1032_v46  ;;  %v1056_v1 = vmul.f32 %v1735_v48, %v2037_v47 }
 0x165   : > { %v1739_v3 = vpop.eup %1738  ;;  %1758 = vrcp.f32 %v1156_v54  ;;  %v1055_v39 = vmul.f32 %v2076_v62, %v1051_v32 }
 0x166   : > { %v2086_v45 = vpop.eup %1740  ;;  %v1060_v6 = vadd.f32 %v1056_v1, %v1052_v52  ;;  %1760 = vtanh.f32 %v966_v50  ;;  %v1034_v10 = vadd.f32 1.0, %v1739_v3 }
 0x167   : > { %v1743_v0 = vpop.eup %1742  ;;  %1762 = vtanh.f32 %v968_v55  ;;  %v1179_v50 = vmul.f32 %v2086_v45, %v1175_v38 }
 0x168   : > { %v1745_v47 = vpop.eup %1744  ;;  %1764 = vtanh.f32 %v1060_v6  ;;  %1072 = vst [vmem:[%s2084_s7] sm:$0xff] %v1060_v6  ;;  %v1158_v35 = vadd.f32 1.0, %v1743_v0 }
 0x169   : > { %v1747_v11 = vpop.eup %1746  ;;  %v1180_v60 = vmul.f32 %v1745_v47, %v2039_v58  ;;  %1766 = vtanh.f32 %v970_v49 }
 0x16a   : > { %v1749_v15 = vpop.eup %1748  ;;  %1768 = vrcp.f32 %v1033_v4  ;;  %v1057_v63 = vmul.f32 %v1747_v11, %v2041_v61 }
 0x16b   : > { %v1751_v20 = vpop.eup %1750  ;;  %1770 = vrcp.f32 %v1157_v8  ;;  %v1184_v23 = vadd.f32 %v1180_v60, %v1176_v13  ;;  %v1181_v5 = vmul.f32 %v1749_v15, %v2046_v12 }
 0x16c   : > { %v1753_v24 = vpop.eup %1752  ;;  %1772 = vrcp.f32 %v1034_v10  ;;  %v1061_v58 = vadd.f32 %v1057_v63, %v1053_v17  ;;  %v1058_v29 = vmul.f32 %v1751_v20, %v2049_v16 }
 0x16d   : > { %v1755_v30 = vpop.eup %1754  ;;  %1774 = vtanh.f32 %v1184_v23  ;;  %1196 = vst [vmem:[%s2084_s7 + $0x8] sm:$0xff] %v1184_v23  ;;  %v1185_v61 = vadd.f32 %v1181_v5, %v1177_v2  ;;  %v1035_v36 = vadd.f32 1.0, %v1753_v24 }
 0x16e   : > { %v1757_v31 = vpop.eup %1756  ;;  %1776 = vtanh.f32 %v1061_v58  ;;  %1073 = vst [vmem:[%s2084_s7 + $0x10] sm:$0xff] %v1061_v58  ;;  %v1062_v12 = vadd.f32 %v1058_v29, %v1054_v28  ;;  %v1159_v41 = vadd.f32 1.0, %v1755_v30 }
 0x16f   : > { %v1759_v34 = vpop.eup %1758  ;;  %1778 = vtanh.f32 %v1185_v61  ;;  %1197 = vst [vmem:[%s2084_s7 + $0x18] sm:$0xff] %v1185_v61 }
 0x170   : > { %v1761_v19 = vpop.eup %1760  ;;  %1780 = vtanh.f32 %v1062_v12  ;;  %1074 = vst [vmem:[%s2084_s7 + $0x20] sm:$0xff] %v1062_v12 }
 0x171   : > { %v1763_v16 = vpop.eup %1762  ;;  %v1182_v22 = vmul.f32 %v1761_v19, %v2051_v18  ;;  %1782 = vrcp.f32 %v1158_v35 }
 0x172   : > { %v1765_v25 = vpop.eup %1764  ;;  %v1059_v40 = vmul.f32 %v1763_v16, %v2053_v21  ;;  %1784 = vrcp.f32 %v1035_v36 }
 0x173   : > { %v1767_v27 = vpop.eup %1766  ;;  %v1068_v42 = vmul.f32 %v1765_v25, %v1757_v31  ;;  %v1186_v44 = vadd.f32 %v1182_v22, %v1178_v37 }
 0x174   : > { %v1769_v46 = vpop.eup %1768  ;;  %v1063_v18 = vadd.f32 %v1059_v40, %v1055_v39  ;;  %v1183_v21 = vmul.f32 %v1767_v27, %v2056_v26 }
 0x175   : > { %v1771_v51 = vpop.eup %1770  ;;  %v1496_v43 = vpack.c.bf16 %v1068_v42, %v1068_v42  ;;  %1786 = vtanh.f32 %v1186_v44  ;;  %1198 = vst [vmem:[%s2084_s7 + $0x28] sm:$0xff] %v1186_v44 }
 0x176   : > { %v1773_v53 = vpop.eup %1772  ;;  %1788 = vtanh.f32 %v1063_v18  ;;  %1075 = vst [vmem:[%s2084_s7 + $0x30] sm:$0xff] %v1063_v18  ;;  %v1187_v54 = vadd.f32 %v1183_v21, %v1179_v50 }
 0x177   : > { %v1775_v55 = vpop.eup %1774  ;;  %1790 = vrcp.f32 %v1159_v41  ;;  %1092 = vst [vmem:[%s2113_s10] sm:$0xf] %v1496_v43 }
 0x178   : > { %v1777_v57 = vpop.eup %1776  ;;  %v1192_v59 = vmul.f32 %v1775_v55, %v1759_v34  ;;  %1792 = vtanh.f32 %v1187_v54  ;;  %1199 = vst [vmem:[%s2084_s7 + $0x38] sm:$0xff] %v1187_v54 }
 0x179   : > { %v1779_v26 = vpop.eup %1778  ;;  %v1069_v49 = vmul.f32 %v1777_v57, %v1769_v46 }
 0x17a   : > { %v1781_v48 = vpop.eup %1780  ;;  %v1500_v62 = vpack.c.bf16 %v1192_v59, %v1192_v59  ;;  %v1193_v52 = vmul.f32 %v1779_v26, %v1771_v51 }
 0x17b   : > { %v1497_v1 = vpack.c.bf16 %v1069_v49, %v1069_v49  ;;  %v1070_v3 = vmul.f32 %v1781_v48, %v1773_v53  ;;  %v1783_v56 = vpop.eup %1782 }
 0x17c   : > { %1216 = vst [vmem:[%s2113_s10 + $0x4] sm:$0xf] %v1500_v62  ;;  %v1501_v45 = vpack.c.bf16 %v1193_v52, %v1193_v52  ;;  %v1785_v6 = vpop.eup %1784 }
 0x17d   : > { %1093 = vst [vmem:[%s2113_s10 + $0x8] sm:$0xf] %v1497_v1  ;;  %v1498_v4 = vpack.c.bf16 %v1070_v3, %v1070_v3 }
 0x17e   : > { %1217 = vst [vmem:[%s2113_s10 + $0xc] sm:$0xf] %v1501_v45 }
 0x17f   : > { %v1787_v0 = vpop.eup %1786  ;;  %1094 = vst [vmem:[%s2113_s10 + $0x10] sm:$0xf] %v1498_v4 }
 0x180   : > { %v1789_v7 = vpop.eup %1788  ;;  %v1194_v8 = vmul.f32 %v1787_v0, %v1783_v56 }
 0x181   : > { %v1791_v47 = vpop.eup %1790  ;;  %v1071_v9 = vmul.f32 %v1789_v7, %v1785_v6 }
 0x182   : > { %v1793_v10 = vpop.eup %1792  ;;  %v1502_v11 = vpack.c.bf16 %v1194_v8, %v1194_v8 }
 0x183   : > { %v1499_v13 = vpack.c.bf16 %v1071_v9, %v1071_v9  ;;  %v1195_v14 = vmul.f32 %v1793_v10, %v1791_v47 }
 0x184   : > { %1218 = vst [vmem:[%s2113_s10 + $0x14] sm:$0xf] %v1502_v11 }
 0x185   : > { %1095 = vst [vmem:[%s2113_s10 + $0x18] sm:$0xf] %v1499_v13  ;;  %v1503_v60 = vpack.c.bf16 %v1195_v14, %v1195_v14 }
 0x187   : > { %1219 = vst [vmem:[%s2113_s10 + $0x1c] sm:$0xf] %v1503_v60 }
 0x188 PF: > { %s15_s17 = sadd.s32 1, %s1816_s17   ;;  %s2141_s15 = smov %s1812_s16 }
 0x189   : > { %p12_p5 = scmp.ge.s32.totalorder %s15_s17, 4   ;;  %s2142_s16 = smov %s2144_s18 }
 0x18b   :  { %14 = sbr.rel (!%p12_p5) target bundleno = 2 (0x2), region = 77 }

</bundles_post_ra>
